<compile_context>
chip_gen: v7x
topology: tpu7x:2x2x1
jax: 0.10.0
libtpu: 0.0.40
codegen_flags: <defaults>
</compile_context>

<pallas_src>
import math
import functools

import jax
import jax.numpy as jnp
from jax import lax
from jax.experimental import pallas as pl
from jax.experimental.pallas import tpu as pltpu


def lds_lr_kernel(x_ref, kdec_ref, h0_ref, beff_ref, ceff_ref, w_ref,
                  shift_ref, out_ref, *, kx):
    """Whole problem (all batch rows, all timesteps) in one invocation.

    x_ref     : (N, d_in)          flattened batch*time inputs  (N = B*T)
    kdec_ref  : (N, N, S)          block-diag causal decay kernel A^(t_n - t_m)
    h0_ref    : (N, S)             A^(t+1) * h0, tiled over batch
    beff_ref  : (d_in, S)          fused B1 @ B2
    ceff_ref  : (S, d_out)         fused C1 @ C2
    w_ref     : (kx, d_in, d_out)  fused per-lag AR weights M1_i^T @ M2_i^T
    shift_ref : (kx, N, N)         block-diag causal shift-by-i matrices
    out_ref   : (N, d_out)
    """
    x = x_ref[...]                                                   # (N, d_in)

    # ---- input projection (1 MXU push): Bu = x @ (B1 B2) -> (N, S) ----
    bu = jnp.dot(x, beff_ref[...], preferred_element_type=jnp.float32)

    # ---- recurrence, vectorized over time (no serial chain, no scratch):
    #      h[n] = A^(t_n+1) h0 + sum_m A^(t_n - t_m) * bu[m]   (same batch,
    #      t_m <= t_n; encoded in the precomputed decay kernel).
    prod = kdec_ref[...] * bu[None, :, :]                            # (N, N, S)  VPU
    all_h = jnp.sum(prod, axis=1) + h0_ref[...]                      # (N, S)     XLU reduce

    # ---- readout (1 MXU push): lds = all_h @ (C1 C2) -> (N, d_out) ----
    acc = jnp.dot(all_h, ceff_ref[...], preferred_element_type=jnp.float32)

    # ---- low-rank AR: ar = sum_i Shift_i @ (x @ W_i) ----
    # (Fused W_i; causal shift applied via precomputed 0/1 matrices so no
    #  in-kernel mask building.  A single unfolded-x matmul via pltpu.roll is
    #  a further option at larger kx/d_in; at these widths it saves ~nothing.)
    for i in range(kx):
        p_i = jnp.dot(x, w_ref[i], preferred_element_type=jnp.float32)       # (N, d_out)
        acc = acc + jnp.dot(shift_ref[i], p_i, preferred_element_type=jnp.float32)

    out_ref[...] = acc.astype(out_ref.dtype)


def lds_lr_forward(inputs, h0, A, B1, B2, C1, C2, M1, M2):
    B, T, d_in = inputs.shape
    S = h0.shape[0]
    d_out = C2.shape[1]
    kx = M1.shape[-1]
    N = B * T
    f32 = jnp.float32

    # ---- parameter preprocessing (pure functions of the weights) ----
    beff = (B1 @ B2).astype(f32)                                     # (d_in, S)
    ceff = (C1 @ C2).astype(f32)                                     # (S, d_out)
    # Fused AR weights: W_i = M1[:,:,i]^T @ M2[:,:,i]^T -> (kx, d_in, d_out)
    w_eff = jnp.einsum('rdi,ori->ido', M1, M2).astype(f32)

    # Decay powers A^k, k = 0..T (cumprod matches repeated-multiply rounding).
    apow = jnp.concatenate(
        [jnp.ones((1, S), f32),
         jnp.cumprod(jnp.broadcast_to(A, (T, S)).astype(f32), axis=0)],
        axis=0)                                                      # (T+1, S)

    trow = jnp.arange(T)[:, None]
    tcol = jnp.arange(T)[None, :]
    diff = trow - tcol                                               # (T, T)
    kdec = jnp.where((diff >= 0)[..., None],
                     apow[jnp.clip(diff, 0, T)], 0.0)                # (T, T, S)
    # Block-diagonal over batch, flattened to (N, N, S).
    kdec_big = (jnp.eye(B, dtype=f32)[:, None, :, None, None]
                * kdec[None, :, None, :, :]).reshape(N, N, S)
    h0term = jnp.tile(apow[1:T + 1] * h0[None, :].astype(f32), (B, 1))   # (N, S)

    # Block-diagonal causal shift-by-i matrices.
    n = jnp.arange(N)
    row, col = n[:, None], n[None, :]
    same_batch = (row // T) == (col // T)
    shifts = jnp.stack(
        [((row - col == i) & same_batch).astype(f32) for i in range(kx)])   # (kx, N, N)

    # Fold batch*time onto the sublane axis (free layout plumbing in HBM).
    x_flat = inputs.reshape(N, d_in).astype(f32)

    kernel = functools.partial(lds_lr_kernel, kx=kx)

    # Single invocation: no grid, whole arrays resident in VMEM (KB-scale).
    out_flat = pl.pallas_call(
        kernel,
        out_shape=jax.ShapeDtypeStruct((N, d_out), inputs.dtype),
    )(x_flat, kdec_big, h0term, beff, ceff, w_eff, shifts)

    return out_flat.reshape(B, T, d_out)


def lds_lr_reference(inputs, h0, A, B1, B2, C1, C2, M1, M2):
    """Pure-JAX reference mirroring the PyTorch forward."""
    Bsz, T, _ = inputs.shape
    S = h0.shape[0]
    d_out = C2.shape[1]
    kx = M1.shape[-1]

    bu = inputs @ B1 @ B2                               # (B, T, S)

    def step(h, bu_t):
        h = A * h + bu_t
        return h, h

    h_init = jnp.broadcast_to(h0, (Bsz, S))
    _, hs = lax.scan(step, h_init, jnp.swapaxes(bu, 0, 1))
    all_h = jnp.swapaxes(hs, 0, 1)                      # (B, T, S)
    lds_out = all_h @ C1 @ C2                           # (B, T, D_out)

    ar = jnp.zeros((Bsz, T, d_out), inputs.dtype)
    for i in range(kx):
        W = M2[:, :, i] @ M1[:, :, i]                   # (D_out, D_in)
        p = jnp.einsum('btd,od->bto', inputs, W)
        shifted = jnp.where(jnp.arange(T)[None, :, None] >= i,
                            jnp.roll(p, i, axis=1), 0.0)
        ar = ar + shifted
    return lds_out + ar


if __name__ == "__main__":
    # Small, module-consistent shapes.
    state_dim, input_dim, output_dim = 32, 16, 16
    kx, rank, lam = 3, 8, 1.0
    bsz, seq_len = 2, 8

    key = jax.random.PRNGKey(0)
    ks = jax.random.split(key, 9)

    h0 = jax.random.normal(ks[0], (state_dim,), jnp.float32)
    # exponential_decay_init: stable eigenvalues in (exp(-lam), 1).
    A = jnp.exp(-lam * jax.random.uniform(ks[1], (state_dim,), jnp.float32))
    B1 = jax.random.normal(ks[2], (input_dim, rank), jnp.float32) / input_dim
    B2 = jax.random.normal(ks[3], (rank, state_dim), jnp.float32) / math.sqrt(rank)
    C1 = jax.random.normal(ks[4], (state_dim, rank), jnp.float32) / state_dim
    C2 = jax.random.normal(ks[5], (rank, output_dim), jnp.float32) / math.sqrt(rank)
    M2 = jax.random.normal(ks[6], (output_dim, rank, kx), jnp.float32) / output_dim
    M1 = jax.random.normal(ks[7], (rank, input_dim, kx), jnp.float32) / math.sqrt(rank)

    inputs = jax.random.normal(ks[8], (bsz, seq_len, input_dim), jnp.float32)

    out = lds_lr_forward(inputs, h0, A, B1, B2, C1, C2, M1, M2)
    out = jax.block_until_ready(out)

    ref = lds_lr_reference(inputs, h0, A, B1, B2, C1, C2, M1, M2)
    assert out.shape == (bsz, seq_len, output_dim), out.shape
    assert jnp.allclose(out, ref, atol=2e-4, rtol=2e-4), \
        float(jnp.max(jnp.abs(out - ref)))

    print("KERNEL_OK")
</pallas_src>

<mosaic_0001>
module attributes {stable_mosaic.version = 11 : i64} {
  func.func @lds_lr_kernel(%arg0: memref<16x16xf32, #tpu.memory_space<vmem>>, %arg1: memref<16x16x32xf32, #tpu.memory_space<vmem>>, %arg2: memref<16x32xf32, #tpu.memory_space<vmem>>, %arg3: memref<16x32xf32, #tpu.memory_space<vmem>>, %arg4: memref<32x16xf32, #tpu.memory_space<vmem>>, %arg5: memref<3x16x16xf32, #tpu.memory_space<vmem>>, %arg6: memref<3x16x16xf32, #tpu.memory_space<vmem>>, %arg7: memref<16x16xf32, #tpu.memory_space<vmem>>) attributes {dimension_semantics = [], scalar_prefetch = 0 : i64, scratch_operands = 0 : i64, tpu.core_type = #tpu.core_type<tc>} {
    %c0 = arith.constant 0 : index
    %c0_0 = arith.constant 0 : index
    %0 = vector.load %arg0[%c0, %c0_0] : memref<16x16xf32, #tpu.memory_space<vmem>>, vector<16x16xf32>
    %c0_1 = arith.constant 0 : index
    %c0_2 = arith.constant 0 : index
    %1 = vector.load %arg3[%c0_1, %c0_2] : memref<16x32xf32, #tpu.memory_space<vmem>>, vector<16x32xf32>
    %cst = arith.constant dense<0.000000e+00> : vector<16x32xf32>
    %2 = tpu.matmul %0, %1, %cst {dimension_numbers = #tpu.dot_dimension_numbers<[1], [0], [0], [1], [0, 0, 1, 1], [], []>} : vector<16x16xf32>, vector<16x32xf32>, vector<16x32xf32> -> vector<16x32xf32>
    %c0_3 = arith.constant 0 : index
    %c0_4 = arith.constant 0 : index
    %c0_5 = arith.constant 0 : index
    %3 = vector.load %arg1[%c0_3, %c0_4, %c0_5] : memref<16x16x32xf32, #tpu.memory_space<vmem>>, vector<16x16x32xf32>
    %4 = vector.shape_cast %2 : vector<16x32xf32> to vector<1x16x32xf32>
    %5 = vector.broadcast %4 : vector<1x16x32xf32> to vector<16x16x32xf32>
    %6 = arith.mulf %3, %5 : vector<16x16x32xf32>
    %cst_6 = arith.constant dense<0.000000e+00> : vector<16x32xf32>
    %7 = vector.multi_reduction <add>, %6, %cst_6 [1] : vector<16x16x32xf32> to vector<16x32xf32>
    %c0_7 = arith.constant 0 : index
    %c0_8 = arith.constant 0 : index
    %8 = vector.load %arg2[%c0_7, %c0_8] : memref<16x32xf32, #tpu.memory_space<vmem>>, vector<16x32xf32>
    %9 = arith.addf %7, %8 : vector<16x32xf32>
    %c0_9 = arith.constant 0 : index
    %c0_10 = arith.constant 0 : index
    %10 = vector.load %arg4[%c0_9, %c0_10] : memref<32x16xf32, #tpu.memory_space<vmem>>, vector<32x16xf32>
    %cst_11 = arith.constant dense<0.000000e+00> : vector<16x16xf32>
    %11 = tpu.matmul %9, %10, %cst_11 {dimension_numbers = #tpu.dot_dimension_numbers<[1], [0], [0], [1], [0, 0, 1, 1], [], []>} : vector<16x32xf32>, vector<32x16xf32>, vector<16x16xf32> -> vector<16x16xf32>
    %c0_12 = arith.constant 0 : index
    %c0_13 = arith.constant 0 : index
    %c0_14 = arith.constant 0 : index
    %12 = vector.load %arg5[%c0_12, %c0_13, %c0_14] : memref<3x16x16xf32, #tpu.memory_space<vmem>>, vector<1x16x16xf32>
    %13 = vector.shape_cast %12 : vector<1x16x16xf32> to vector<16x16xf32>
    %cst_15 = arith.constant dense<0.000000e+00> : vector<16x16xf32>
    %14 = tpu.matmul %0, %13, %cst_15 {dimension_numbers = #tpu.dot_dimension_numbers<[1], [0], [0], [1], [0, 0, 1, 1], [], []>} : vector<16x16xf32>, vector<16x16xf32>, vector<16x16xf32> -> vector<16x16xf32>
    %c0_16 = arith.constant 0 : index
    %c0_17 = arith.constant 0 : index
    %c0_18 = arith.constant 0 : index
    %15 = vector.load %arg6[%c0_16, %c0_17, %c0_18] : memref<3x16x16xf32, #tpu.memory_space<vmem>>, vector<1x16x16xf32>
    %16 = vector.shape_cast %15 : vector<1x16x16xf32> to vector<16x16xf32>
    %cst_19 = arith.constant dense<0.000000e+00> : vector<16x16xf32>
    %17 = tpu.matmul %16, %14, %cst_19 {dimension_numbers = #tpu.dot_dimension_numbers<[1], [0], [0], [1], [0, 0, 1, 1], [], []>} : vector<16x16xf32>, vector<16x16xf32>, vector<16x16xf32> -> vector<16x16xf32>
    %18 = arith.addf %11, %17 : vector<16x16xf32>
    %c1 = arith.constant 1 : index
    %c0_20 = arith.constant 0 : index
    %c0_21 = arith.constant 0 : index
    %19 = vector.load %arg5[%c1, %c0_20, %c0_21] : memref<3x16x16xf32, #tpu.memory_space<vmem>>, vector<1x16x16xf32>
    %20 = vector.shape_cast %19 : vector<1x16x16xf32> to vector<16x16xf32>
    %cst_22 = arith.constant dense<0.000000e+00> : vector<16x16xf32>
    %21 = tpu.matmul %0, %20, %cst_22 {dimension_numbers = #tpu.dot_dimension_numbers<[1], [0], [0], [1], [0, 0, 1, 1], [], []>} : vector<16x16xf32>, vector<16x16xf32>, vector<16x16xf32> -> vector<16x16xf32>
    %c1_23 = arith.constant 1 : index
    %c0_24 = arith.constant 0 : index
    %c0_25 = arith.constant 0 : index
    %22 = vector.load %arg6[%c1_23, %c0_24, %c0_25] : memref<3x16x16xf32, #tpu.memory_space<vmem>>, vector<1x16x16xf32>
    %23 = vector.shape_cast %22 : vector<1x16x16xf32> to vector<16x16xf32>
    %cst_26 = arith.constant dense<0.000000e+00> : vector<16x16xf32>
    %24 = tpu.matmul %23, %21, %cst_26 {dimension_numbers = #tpu.dot_dimension_numbers<[1], [0], [0], [1], [0, 0, 1, 1], [], []>} : vector<16x16xf32>, vector<16x16xf32>, vector<16x16xf32> -> vector<16x16xf32>
    %25 = arith.addf %18, %24 : vector<16x16xf32>
    %c2 = arith.constant 2 : index
    %c0_27 = arith.constant 0 : index
    %c0_28 = arith.constant 0 : index
    %26 = vector.load %arg5[%c2, %c0_27, %c0_28] : memref<3x16x16xf32, #tpu.memory_space<vmem>>, vector<1x16x16xf32>
    %27 = vector.shape_cast %26 : vector<1x16x16xf32> to vector<16x16xf32>
    %cst_29 = arith.constant dense<0.000000e+00> : vector<16x16xf32>
    %28 = tpu.matmul %0, %27, %cst_29 {dimension_numbers = #tpu.dot_dimension_numbers<[1], [0], [0], [1], [0, 0, 1, 1], [], []>} : vector<16x16xf32>, vector<16x16xf32>, vector<16x16xf32> -> vector<16x16xf32>
    %c2_30 = arith.constant 2 : index
    %c0_31 = arith.constant 0 : index
    %c0_32 = arith.constant 0 : index
    %29 = vector.load %arg6[%c2_30, %c0_31, %c0_32] : memref<3x16x16xf32, #tpu.memory_space<vmem>>, vector<1x16x16xf32>
    %30 = vector.shape_cast %29 : vector<1x16x16xf32> to vector<16x16xf32>
    %cst_33 = arith.constant dense<0.000000e+00> : vector<16x16xf32>
    %31 = tpu.matmul %30, %28, %cst_33 {dimension_numbers = #tpu.dot_dimension_numbers<[1], [0], [0], [1], [0, 0, 1, 1], [], []>} : vector<16x16xf32>, vector<16x16xf32>, vector<16x16xf32> -> vector<16x16xf32>
    %32 = arith.addf %25, %31 : vector<16x16xf32>
    %c0_34 = arith.constant 0 : index
    %c0_35 = arith.constant 0 : index
    %33 = vector.load %arg7[%c0_34, %c0_35] : memref<16x16xf32, #tpu.memory_space<vmem>>, vector<16x16xf32>
    tpu.vector_store %arg7[%c0_34, %c0_35], %32 {strides = array<i32>} : memref<16x16xf32, #tpu.memory_space<vmem>>, vector<16x16xf32>,
    return
  }
}

</mosaic_0001>

<bundles_post_ra>
// kernel: tpu_custom_call.1
= control target key start
LH: loop header
LB: loop body
LE: loop exit
PB: predicated region body
PF: predicated region fallthrough
CT: control target
= control target key end

     0   :  { %12 = vsyncpa [#allocation3], 0  ;;  %s1685_s0 = inlined_call_operand.vmem [shape: f32[16,16], index: 0, kind: input, shape index: {}]   ;;  %s1686_s1 = inlined_call_operand.hbm [shape: f32[16,16,32], index: 1, kind: input, shape index: {}]   ;;  %s1687_s2 = inlined_call_operand.hbm [shape: f32[16,32], index: 2, kind: input, shape index: {}]   ;;  %s1688_s3 = inlined_call_operand.hbm [shape: f32[16,32], index: 3, kind: input, shape index: {}]   ;;  %s1689_s4 = inlined_call_operand.vmem [shape: f32[32,16], index: 4, kind: input, shape index: {}]   ;;  %s1690_s5 = inlined_call_operand.vmem [shape: f32[3,16,16], index: 5, kind: input, shape index: {}]   ;;  %s1691_s6 = inlined_call_operand.hbm [shape: f32[3,16,16], index: 6, kind: input, shape index: {}]   ;;  %s1692_s7 = inlined_call_operand.hbm [shape: f32[16,16], index: 7, kind: output, shape index: {}]  }
   0x1   :  { %13 = vsyncpa [#allocation6], 0 }
   0x2   :  { %14 = vsyncpa [#allocation9], 0 }
   0x3   :  { %15 = vsyncpa [#allocation4], 0  ;;  %s1351_s24 = smov [#allocation5]   ;;  %s1352_s26 = smov [#allocation2]  }
   0x4   :  { %s35_s25 = sshll.u32 %s1351_s24, 4  ;;  %s23_s27 = sshll.u32 %s1352_s26, 4  ;;  %s36_s25 = int_to_ptr.vmem [resolvable:$true] %s35_s25  ;;  %s1398_s27 = int_to_ptr.vmem [resolvable:$true] %s23_s27 }
   0x5   :  { %s1233_s30 = scalar_lea.hbm %s1687_s2, 256 }
   0x6   :  { %p1234_p0 = scmp.ne.s32.totalorder %s1687_s2, %s1233_s30  ;;  %p1237_p1 = scmp.lt.u32.totalorder %s1233_s30, %s1687_s2 }
   0x8   :  { %p1239_p2 = pnand %p1237_p1, %p1234_p0 }
   0xa   :  { %1242 = shalt.err (!%p1239_p2)
}
   0xb   :  { %s1243_s12 = scalar_lea.vmem %s36_s25, 256  ;;  %p1248_p4 = scmp.lt.s32.totalorder %s36_s25, %s36_s25 }
   0xc   :  { %p1244_p3 = scmp.ne.s32.totalorder %s36_s25, %s1243_s12  ;;  %p1249_p5 = scmp.lt.s32.totalorder %s1243_s12, %s1243_s12 }
   0xe   :  { %p1250_p6 = por %p1249_p5, %p1248_p4 }
  0x10   :  { %p1251_p7 = pnand %p1250_p6, %p1244_p3 }
  0x12   :  { %1254 = shalt.err (!%p1251_p7)
}
  0x13   :  { %s1353_s13 = smov 128   ;;  %s1354_s14 = smov 8  }
  0x14   :  { %41 = dma.hbm_to_vmem [thread:$0]  %s1687_s2, 256, %s36_s25, [#allocation6], %s1353_s13, %s1353_s13, %s1354_s14  }
  0x15   :  { %s1255_s19 = scalar_lea.hbm %s1686_s1, 4096 }
  0x16   :  { %p1256_p8 = scmp.ne.s32.totalorder %s1686_s1, %s1255_s19  ;;  %p1259_p9 = scmp.lt.u32.totalorder %s1255_s19, %s1686_s1 }
  0x18   :  { %p1261_p10 = pnand %p1259_p9, %p1256_p8 }
  0x1a   :  { %1264 = shalt.err (!%p1261_p10)
}
  0x1b   :  { %s1265_s24 = scalar_lea.vmem %s1398_s27, 4096  ;;  %p1270_p12 = scmp.lt.s32.totalorder %s1398_s27, %s1398_s27 }
  0x1c   :  { %p1266_p11 = scmp.ne.s32.totalorder %s1398_s27, %s1265_s24  ;;  %p1271_p13 = scmp.lt.s32.totalorder %s1265_s24, %s1265_s24 }
  0x1e   :  { %p1272_p0 = por %p1271_p13, %p1270_p12 }
  0x20   :  { %p1273_p1 = pnand %p1272_p0, %p1266_p11 }
  0x22   :  { %1276 = shalt.err (!%p1273_p1)
}
  0x23   :  { %29 = dma.hbm_to_vmem [thread:$0]  %s1686_s1, 4096, %s1398_s27, [#allocation3], %s1353_s13, %s1353_s13, %s1354_s14  }
  0x24   :  { %s1355_s26 = smov [#allocation7]   ;;  %s1356_s29 = smov [#allocation8]  }
  0x25   :  { %s47_s28 = sshll.u32 %s1355_s26, 4  ;;  %s63_s30 = sshll.u32 %s1356_s29, 4  ;;  %s48_s28 = int_to_ptr.vmem [resolvable:$true] %s47_s28  ;;  %s1435_s30 = int_to_ptr.vmem [resolvable:$true] %s63_s30 }
  0x26   :  { %s1277_s10 = scalar_lea.hbm %s1688_s3, 256 }
  0x27   :  { %p1278_p2 = scmp.ne.s32.totalorder %s1688_s3, %s1277_s10  ;;  %p1281_p3 = scmp.lt.u32.totalorder %s1277_s10, %s1688_s3 }
  0x29   :  { %p1283_p4 = pnand %p1281_p3, %p1278_p2 }
  0x2b   :  { %1286 = shalt.err (!%p1283_p4)
}
  0x2c   :  { %s1287_s1 = scalar_lea.vmem %s48_s28, 256  ;;  %p1292_p6 = scmp.lt.s32.totalorder %s48_s28, %s48_s28 }
  0x2d   :  { %p1288_p5 = scmp.ne.s32.totalorder %s48_s28, %s1287_s1  ;;  %p1293_p7 = scmp.lt.s32.totalorder %s1287_s1, %s1287_s1 }
  0x2f   :  { %p1294_p8 = por %p1293_p7, %p1292_p6 }
  0x31   :  { %p1295_p9 = pnand %p1294_p8, %p1288_p5 }
  0x33   :  { %1298 = shalt.err (!%p1295_p9)
}
  0x34   :  { %53 = dma.hbm_to_vmem [thread:$0]  %s1688_s3, 256, %s48_s28, [#allocation6], %s1353_s13, %s1353_s13, %s1354_s14  }
  0x35   :  { %s1299_s20 = scalar_lea.hbm %s1691_s6, 768 }
  0x36   :  { %p1300_p10 = scmp.ne.s32.totalorder %s1691_s6, %s1299_s20  ;;  %p1303_p11 = scmp.lt.u32.totalorder %s1299_s20, %s1691_s6 }
  0x38   :  { %p1305_p12 = pnand %p1303_p11, %p1300_p10 }
  0x3a   :  { %1308 = shalt.err (!%p1305_p12)
}
  0x3b   :  { %s1309_s2 = scalar_lea.vmem %s1435_s30, 768  ;;  %p1314_p0 = scmp.lt.s32.totalorder %s1435_s30, %s1435_s30 }
  0x3c   :  { %p1310_p13 = scmp.ne.s32.totalorder %s1435_s30, %s1309_s2  ;;  %p1315_p1 = scmp.lt.s32.totalorder %s1309_s2, %s1309_s2 }
  0x3e   :  { %p1316_p2 = por %p1315_p1, %p1314_p0 }
  0x40   :  { %p1317_p3 = pnand %p1316_p2, %p1310_p13 }
  0x42   :  { %1320 = shalt.err (!%p1317_p3)
}
  0x43   :  { %69 = dma.hbm_to_vmem [thread:$0]  %s1691_s6, 768, %s1435_s30, [#allocation9], %s1353_s13, %s1353_s13, %s1354_s14  }
  0x44   :  { %1343 = dma.done.wait [#allocation3], 4096  }
  0x45   :  { %1344 = vsyncadd [#allocation3], 4294963200 }
  0x46   :  { %1345 = dma.done.wait [#allocation6], 512  }
  0x47   :  { %1346 = vsyncadd [#allocation6], 4294966784 }
  0x48   :  { %1347 = dma.done.wait [#allocation9], 768  }
  0x49   :  { %1348 = vsyncadd [#allocation9], 4294966528  ;;  %vm86_vm0 = vcmask 130048   ;;  %v84_v0 = vld [vmem:[#allocation7] sm:$0xff]  ;;  %v85_v1 = vld [vmem:[#allocation7 + $0x8] sm:$0xff]  ;;  %vm232_vm1 = vcmask 261120  }
  0x4a   :  { %v82_v2 = vld [vmem:[%s1685_s0] sm:$0xff]  ;;  %v1184_v3 = vpack.c.bf16 %v85_v1, %v84_v0  ;;  %v432_v5 = vld [vmem:[%s1690_s5 + $0x8] sm:$0xff]  ;;  %v1078_v7 = vld [vmem:[%s1690_s5 + $0x10] sm:$0xff]  ;;  %vm608_vm2 = vcmask 1041409   ;;  %vm611_vm3 = vcmask 1042434   ;;  %vm614_vm4 = vcmask 1043459  }
  0x4b   :  { %1128 = vmatprep.mubr.msk.f32.mxu1 %vm86_vm0, %v82_v2  ;;  %v431_v4 = vld [vmem:[%s1690_s5] sm:$0xff]  ;;  %v1079_v8 = vld [vmem:[%s1690_s5 + $0x18] sm:$0xff]  ;;  %v83_v9 = vld [vmem:[%s1685_s0 + $0x8] sm:$0xff]  ;;  %vm617_vm5 = vcmask 1044484   ;;  %vm620_vm6 = vcmask 1045509   ;;  %vm623_vm7 = vcmask 1046534  }
  0x4c   :  { %v1188_v6 = vpack.c.bf16 %v432_v5, %v431_v4  ;;  %1185 = vmatprep.subr.bf16.mxu1 %v1184_v3  ;;  %v1204_v10 = vpack.c.bf16 %v1079_v8, %v1078_v7  ;;  %v1084_v11 = vld [vmem:[%s1690_s5 + $0x20] sm:$0xff]  ;;  %v1085_v12 = vld [vmem:[%s1690_s5 + $0x28] sm:$0xff]  ;;  %v429_v17 = vld [vmem:[%s1689_s4 + $0x10] sm:$0xff]  ;;  %vm626_vm8 = vcmask 1047559  }
  0x4d   :  { %1187 = vmatpush3.bf16.msra.mxu1 %v1184_v3  ;;  %v1212_v13 = vpack.c.bf16 %v1085_v12, %v1084_v11  ;;  %v508_v14 = vld [vmem:[#allocation8] sm:$0xff]  ;;  %v428_v16 = vld [vmem:[%s1689_s4 + $0x8] sm:$0xff]  ;;  %v430_v18 = vld [vmem:[%s1689_s4 + $0x18] sm:$0xff] }
  0x4e   :  { %1189 = vmatprep.subr.bf16.mxu1 %v1188_v6  ;;  %1142 = vmatprep.mubr.msk.f32.mxu0 %vm86_vm0, %v508_v14  ;;  %v427_v15 = vld [vmem:[%s1689_s4] sm:$0xff]  ;;  %v169_v20 = vld [vmem:[#allocation2 + $0x8] sm:$0xff]  ;;  %v171_v21 = vld [vmem:[#allocation2 + $0x18] sm:$0xff]  ;;  %v1523_v25 = vpack.c.bf16 %v430_v18, %v429_v17  ;;  %s1357_s4 = smov [#allocation10]  }
  0x4f   :  { %v1517_v19 = vld [vmem:[#allocation5] sm:$0xff]  ;;  %v173_v22 = vld [vmem:[#allocation2 + $0x28] sm:$0xff]  ;;  %v1521_v24 = vpack.c.bf16 %v428_v16, %v427_v15  ;;  %v170_v27 = vld [vmem:[#allocation2 + $0x10] sm:$0xff]  ;;  %s1056_s2 = sshll.u32 %s1357_s4, 4  ;;  %s1057_s2 = int_to_ptr.vmem [resolvable:$true] %s1056_s2 }
  0x50   :  { %1129 = vmatmul.mubr.msk.f32.vlgmr.msra.gmra.mrb[0].mxu1 %vm86_vm0, %v83_v9  ;;  %v1519_v23 = vld [vmem:[#allocation5 + $0x8] sm:$0xff]  ;;  %v168_v26 = vld [vmem:[#allocation2] sm:$0xff]  ;;  %v174_v29 = vld [vmem:[#allocation2 + $0x30] sm:$0xff]  ;;  %v381_v33 = vrot.slane %v1517_v19, 1  ;;  %v382_v34 = vrot.slane %v1517_v19, 2  ;;  %v383_v35 = vrot.slane %v1517_v19, 3  ;;  %p1326_p5 = scmp.lt.s32.totalorder %s1057_s2, %s1057_s2 }
  0x51   :  { %1191 = vmatpush3.bf16.msra.mxu1 %v1188_v6  ;;  %1135 = vmatprep.mubr.msk.f32.mxu1 %vm86_vm0, %v82_v2  ;;  %v172_v28 = vld [vmem:[#allocation2 + $0x20] sm:$0xff]  ;;  %v175_v30 = vld [vmem:[#allocation2 + $0x38] sm:$0xff]  ;;  %v177_v32 = vld [vmem:[#allocation2 + $0x48] sm:$0xff]  ;;  %v384_v36 = vrot.slane %v1517_v19, 4  ;;  %v385_v39 = vrot.slane %v1517_v19, 5  ;;  %v386_v40 = vrot.slane %v1517_v19, 6 }
  0x52   :  { %1205 = vmatprep.subr.bf16.mxu1 %v1204_v10  ;;  %v176_v31 = vld [vmem:[#allocation2 + $0x40] sm:$0xff]  ;;  %v178_v37 = vld [vmem:[#allocation2 + $0x50] sm:$0xff]  ;;  %v179_v38 = vld [vmem:[#allocation2 + $0x58] sm:$0xff]  ;;  %v387_v41 = vrot.slane %v1517_v19, 7  ;;  %v388_v42 = vrot.slane %v1519_v23, 1  ;;  %v389_v45 = vrot.slane %v1519_v23, 2 }
  0x53   :  { %v180_v44 = vld [vmem:[#allocation2 + $0x60] sm:$0xff]  ;;  %v390_v46 = vrot.slane %v1519_v23, 3  ;;  %v391_v47 = vrot.slane %v1519_v23, 4  ;;  %v392_v48 = vrot.slane %v1519_v23, 5  ;;  %v181_v50 = vld [vmem:[#allocation2 + $0x68] sm:$0xff]  ;;  %v182_v51 = vld [vmem:[#allocation2 + $0x70] sm:$0xff] }
  0x54   :  { %1136 = vmatmul.mubr.msk.f32.vlgmr.msra.gmra.mrb[2].mxu1 %vm86_vm0, %v83_v9  ;;  %v183_v52 = vld [vmem:[#allocation2 + $0x78] sm:$0xff]  ;;  %s1321_s3 = scalar_lea.vmem %s1057_s2, 256 }
  0x55   :  { %1207 = vmatpush3.bf16.msra.mxu1 %v1204_v10  ;;  %1160 = vmatprep.mubr.msk.f32.mxu1 %vm86_vm0, %v82_v2  ;;  %p1322_p4 = scmp.ne.s32.totalorder %s1057_s2, %s1321_s3  ;;  %p1327_p6 = scmp.lt.s32.totalorder %s1321_s3, %s1321_s3 }
  0x56   :  { %1213 = vmatprep.subr.bf16.mxu1 %v1212_v13 }
  0x57   :  { %p1328_p7 = por %p1327_p6, %p1326_p5 }
  0x58   :  { %1161 = vmatmul.mubr.msk.f32.vlgmr.msra.gmra.mrb[4].mxu1 %vm86_vm0, %v83_v9 }
  0x59   :  { %1215 = vmatpush3.bf16.msra.mxu1 %v1212_v13  ;;  %1174 = vmatprep.mubr.msk.f32.mxu1 %vm86_vm0, %v82_v2  ;;  %p1329_p8 = pnand %p1328_p7, %p1322_p4 }
  0x5c   :  { %1175 = vmatmul.mubr.msk.f32.vlgmr.msra.gmra.mrb[6].mxu1 %vm86_vm0, %v83_v9 }
 0x123   :  { %v1533_v43 = vpop.f32.mrb[0].mxu1 }
 0x124   :  { %v1539_v49 = vpop.f32.mrb[1].mxu1  ;;  %v201_v53 = vmul.f32 %v1533_v43, %v169_v20  ;;  %v203_v54 = vmul.f32 %v1533_v43, %v171_v21  ;;  %v205_v55 = vmul.f32 %v1533_v43, %v173_v22  ;;  %v207_v56 = vmul.f32 %v1533_v43, %v175_v30 }
 0x125   :  { %v200_v57 = vmul.f32 %v168_v26, %v1539_v49  ;;  %v202_v58 = vmul.f32 %v170_v27, %v1539_v49  ;;  %v204_v59 = vmul.f32 %v172_v28, %v1539_v49  ;;  %v206_v60 = vmul.f32 %v174_v29, %v1539_v49  ;;  %v509_v28 = vld [vmem:[#allocation8 + $0x8] sm:$0xff] }
 0x126   :  { %v208_v61 = vmul.f32 %v176_v31, %v1539_v49  ;;  %v209_v62 = vmul.f32 %v1533_v43, %v177_v32  ;;  %v210_v63 = vmul.f32 %v178_v37, %v1539_v49  ;;  %v211_v0 = vmul.f32 %v1533_v43, %v179_v38 }
 0x127   :  { %v1137_v1 = vpop.f32.mrb[2].mxu1  ;;  %v212_v2 = vmul.f32 %v180_v44, %v1539_v49  ;;  %v213_v3 = vmul.f32 %v1533_v43, %v181_v50  ;;  %v214_v4 = vmul.f32 %v182_v51, %v1539_v49  ;;  %v215_v5 = vmul.f32 %v1533_v43, %v183_v52 }
 0x128   :  { %v499_v6 = vpop.f32.mrb[3].mxu1  ;;  %v233_v7 = vsel %vm232_vm1, %v200_v57, 0.0  ;;  %v234_v8 = vsel %vm232_vm1, %v201_v53, 0.0  ;;  %v242_v9 = vsel %vm232_vm1, %v202_v58, 0.0  ;;  %v243_v10 = vsel %vm232_vm1, %v203_v54, 0.0 }
 0x129   :  { %v1192_v11 = vpack.c.bf16 %v1137_v1, %v499_v6  ;;  %v235_v12 = vadd.f32 %v234_v8, %v233_v7  ;;  %v244_v13 = vadd.f32 %v243_v10, %v242_v9  ;;  %v251_v14 = vsel %vm232_vm1, %v204_v59, 0.0 }
 0x12a   :  { %v252_v15 = vsel %vm232_vm1, %v205_v55, 0.0  ;;  %v260_v16 = vsel %vm232_vm1, %v206_v60, 0.0  ;;  %v261_v17 = vsel %vm232_vm1, %v207_v56, 0.0  ;;  %v269_v18 = vsel %vm232_vm1, %v208_v61, 0.0 }
 0x12b   :  { %1193 = vmatprep.subr.bf16.mxu0 %v1192_v11  ;;  %v1162_v20 = vpop.f32.mrb[4].mxu1  ;;  %v236_v21 = vrot.slane %v235_v12, 4  ;;  %v245_v22 = vrot.slane %v244_v13, 4  ;;  %v253_v26 = vadd.f32 %v252_v15, %v251_v14  ;;  %v262_v27 = vadd.f32 %v261_v17, %v260_v16 }
 0x12c   :  { %1195 = vmatpush3.bf16.msra.mxu0 %v1192_v11  ;;  %v790_v29 = vpop.f32.mrb[5].mxu1  ;;  %v270_v30 = vsel %vm232_vm1, %v209_v62, 0.0  ;;  %v278_v31 = vsel %vm232_vm1, %v210_v63, 0.0  ;;  %v279_v32 = vsel %vm232_vm1, %v211_v0, 0.0  ;;  %v287_v37 = vsel %vm232_vm1, %v212_v2, 0.0 }
 0x12d   :  { %1197 = vmatprep.subr.bf16.mxu0 %v1521_v24  ;;  %v1571_v38 = vpack.c.bf16 %v1162_v20, %v790_v29  ;;  %v237_v44 = vadd.f32 %v236_v21, %v235_v12  ;;  %v246_v50 = vadd.f32 %v245_v22, %v244_v13  ;;  %v254_v51 = vrot.slane %v253_v26, 4  ;;  %v184_v29 = vld [vmem:[#allocation2 + $0x80] sm:$0xff] }
 0x12e   :  { %v263_v52 = vrot.slane %v262_v27, 4  ;;  %v271_v53 = vadd.f32 %v270_v30, %v269_v18  ;;  %v280_v54 = vadd.f32 %v279_v32, %v278_v31  ;;  %v288_v55 = vsel %vm232_vm1, %v213_v3, 0.0 }
 0x12f   :  { %1143 = vmatmul.mubr.msk.f32.vlgmr.msra.gmra.mrb[0].mxu0 %vm86_vm0, %v509_v28  ;;  %v238_v56 = vrot.slane %v237_v44, 2  ;;  %v247_v57 = vrot.slane %v246_v50, 2  ;;  %v255_v58 = vadd.f32 %v254_v51, %v253_v26  ;;  %v289_v59 = vadd.f32 %v288_v55, %v287_v37  ;;  %v1575_v60 = vpop.f32.mrb[6].mxu1 }
 0x130   :  { %1199 = vmatpush3.bf16.msra.mxu0 %v1521_v24  ;;  %v264_v61 = vadd.f32 %v263_v52, %v262_v27  ;;  %v272_v62 = vrot.slane %v271_v53, 4  ;;  %v281_v63 = vrot.slane %v280_v54, 4  ;;  %v296_v0 = vsel %vm232_vm1, %v214_v4, 0.0  ;;  %v1579_v1 = vpop.f32.mrb[7].mxu1  ;;  %v185_v52 = vld [vmem:[#allocation2 + $0x88] sm:$0xff] }
 0x131   :  { %1201 = vmatprep.subr.bf16.mxu0 %v1523_v25  ;;  %v239_v2 = vadd.f32 %v238_v56, %v237_v44  ;;  %v248_v3 = vadd.f32 %v247_v57, %v246_v50  ;;  %v256_v6 = vrot.slane %v255_v58, 2  ;;  %v290_v7 = vrot.slane %v289_v59, 4 }
 0x132   :  { %v265_v8 = vrot.slane %v264_v61, 2  ;;  %v273_v9 = vadd.f32 %v272_v62, %v271_v53  ;;  %v282_v10 = vadd.f32 %v281_v63, %v280_v54  ;;  %v297_v11 = vsel %vm232_vm1, %v215_v5, 0.0  ;;  %v187_v62 = vld [vmem:[#allocation2 + $0x98] sm:$0xff] }
 0x133   :  { %v240_v24 = vrot.slane %v239_v2, 1  ;;  %v249_v12 = vrot.slane %v248_v3, 1  ;;  %v257_v13 = vadd.f32 %v256_v6, %v255_v58  ;;  %v291_v14 = vadd.f32 %v290_v7, %v289_v59 }
 0x134   :  { %1203 = vmatpush3.bf16.msra.mxu0 %v1523_v25  ;;  %v266_v4 = vadd.f32 %v265_v8, %v264_v61  ;;  %v274_v15 = vrot.slane %v273_v9, 2  ;;  %v283_v16 = vrot.slane %v282_v10, 2  ;;  %v298_v17 = vadd.f32 %v297_v11, %v296_v0 }
 0x135   :  { %1209 = vmatprep.subr.bf16.mxu0 %v1571_v38  ;;  %v241_v18 = vadd.f32 %v240_v24, %v239_v2  ;;  %v250_v20 = vadd.f32 %v249_v12, %v248_v3  ;;  %v258_v21 = vrot.slane %v257_v13, 1  ;;  %v292_v22 = vrot.slane %v291_v14, 2  ;;  %v191_v12 = vld [vmem:[#allocation2 + $0xb8] sm:$0xff] }
 0x136   :  { %v267_v5 = vrot.slane %v266_v4, 1  ;;  %v275_v26 = vadd.f32 %v274_v15, %v273_v9  ;;  %v284_v27 = vadd.f32 %v283_v16, %v282_v10  ;;  %v299_v28 = vrot.slane %v298_v17, 4  ;;  %v188_v9 = vld [vmem:[#allocation2 + $0xa0] sm:$0xff]  ;;  %v189_v10 = vld [vmem:[#allocation2 + $0xa8] sm:$0xff] }
 0x137   :  { %v259_v30 = vadd.f32 %v258_v21, %v257_v13  ;;  %v293_v31 = vadd.f32 %v292_v22, %v291_v14  ;;  %v411_v25 = vadd.f32 %v1517_v19, %v241_v18  ;;  %v412_v32 = vadd.f32 %v381_v33, %v250_v20  ;;  %v186_v33 = vld [vmem:[#allocation2 + $0x90] sm:$0xff]  ;;  %v192_v13 = vld [vmem:[#allocation2 + $0xc0] sm:$0xff]  ;;  %v195_v20 = vld [vmem:[#allocation2 + $0xd8] sm:$0xff] }
 0x138   :  { %v268_v37 = vadd.f32 %v267_v5, %v266_v4  ;;  %v276_v44 = vrot.slane %v275_v26, 1  ;;  %v285_v50 = vrot.slane %v284_v27, 1  ;;  %v300_v51 = vadd.f32 %v299_v28, %v298_v17  ;;  %v193_v17 = vld [vmem:[#allocation2 + $0xc8] sm:$0xff]  ;;  %v194_v18 = vld [vmem:[#allocation2 + $0xd0] sm:$0xff]  ;;  %v196_v22 = vld [vmem:[#allocation2 + $0xe0] sm:$0xff] }
 0x139   :  { %v294_v53 = vrot.slane %v293_v31, 1  ;;  %v413_v54 = vadd.f32 %v382_v34, %v259_v30  ;;  %v607_v55 = vrot.slane %v412_v32, 7  ;;  %v216_v56 = vmul.f32 %v184_v29, %v1539_v49  ;;  %v197_v5 = vld [vmem:[#allocation2 + $0xe8] sm:$0xff]  ;;  %v198_v30 = vld [vmem:[#allocation2 + $0xf0] sm:$0xff] }
 0x13a   :  { %v277_v57 = vadd.f32 %v276_v44, %v275_v26  ;;  %v286_v58 = vadd.f32 %v285_v50, %v284_v27  ;;  %v301_v59 = vrot.slane %v300_v51, 2  ;;  %v414_v61 = vadd.f32 %v383_v35, %v268_v37  ;;  %v190_v35 = vld [vmem:[#allocation2 + $0xb0] sm:$0xff] }
 0x13b   :  { %v295_v63 = vadd.f32 %v294_v53, %v293_v31  ;;  %v609_v0 = vsel %vm608_vm2, %v607_v55, %v411_v25  ;;  %v610_v2 = vrot.slane %v413_v54, 6  ;;  %v217_v3 = vmul.f32 %v1533_v43, %v185_v52  ;;  %v199_v31 = vld [vmem:[#allocation2 + $0xf8] sm:$0xff] }
 0x13c   :  { %v302_v6 = vadd.f32 %v301_v59, %v300_v51  ;;  %v415_v34 = vadd.f32 %v384_v36, %v277_v57  ;;  %v416_v7 = vadd.f32 %v385_v39, %v286_v58  ;;  %v613_v8 = vrot.slane %v414_v61, 5 }
 0x13d   :  { %v417_v11 = vadd.f32 %v386_v40, %v295_v63  ;;  %v612_v24 = vsel %vm611_vm3, %v610_v2, %v609_v0  ;;  %v218_v14 = vmul.f32 %v186_v33, %v1539_v49  ;;  %v219_v4 = vmul.f32 %v1533_v43, %v187_v62 }
 0x13e   :  { %v303_v15 = vrot.slane %v302_v6, 1  ;;  %v615_v36 = vsel %vm614_vm4, %v613_v8, %v612_v24  ;;  %v616_v16 = vrot.slane %v415_v34, 4  ;;  %v619_v39 = vrot.slane %v416_v7, 3 }
 0x13f   :  { %v622_v21 = vrot.slane %v417_v11, 2  ;;  %v220_v40 = vmul.f32 %v188_v9, %v1539_v49  ;;  %v221_v26 = vmul.f32 %v1533_v43, %v189_v10  ;;  %v222_v27 = vmul.f32 %v190_v35, %v1539_v49 }
 0x140   :  { %v304_v28 = vadd.f32 %v303_v15, %v302_v6  ;;  %v618_v29 = vsel %vm617_vm5, %v616_v16, %v615_v36  ;;  %v223_v25 = vmul.f32 %v1533_v43, %v191_v12  ;;  %v224_v32 = vmul.f32 %v192_v13, %v1539_v49 }
 0x141   :  { %v621_v37 = vsel %vm620_vm6, %v619_v39, %v618_v29  ;;  %v225_v44 = vmul.f32 %v1533_v43, %v193_v17  ;;  %v226_v50 = vmul.f32 %v194_v18, %v1539_v49  ;;  %v227_v51 = vmul.f32 %v1533_v43, %v195_v20 }
 0x142   :  { %v418_v52 = vadd.f32 %v387_v41, %v304_v28  ;;  %v624_v53 = vsel %vm623_vm7, %v622_v21, %v621_v37  ;;  %v228_v54 = vmul.f32 %v196_v22, %v1539_v49  ;;  %v229_v55 = vmul.f32 %v1533_v43, %v197_v5 }
 0x143   :  { %v230_v57 = vmul.f32 %v198_v30, %v1539_v49  ;;  %v231_v58 = vmul.f32 %v1533_v43, %v199_v31  ;;  %v305_v59 = vsel %vm232_vm1, %v216_v56, 0.0  ;;  %v306_v61 = vsel %vm232_vm1, %v217_v3, 0.0 }
 0x144   :  { %v625_v33 = vrot.slane %v418_v52, 1  ;;  %v307_v62 = vadd.f32 %v306_v61, %v305_v59  ;;  %v314_v63 = vsel %vm232_vm1, %v218_v14, 0.0  ;;  %v315_v19 = vsel %vm232_vm1, %v219_v4, 0.0 }
 0x145   :  { %v316_v41 = vadd.f32 %v315_v19, %v314_v63  ;;  %v323_v0 = vsel %vm232_vm1, %v220_v40, 0.0  ;;  %v324_v2 = vsel %vm232_vm1, %v221_v26, 0.0  ;;  %v332_v6 = vsel %vm232_vm1, %v222_v27, 0.0 }
 0x146   :  { %v627_v49 = vsel %vm626_vm8, %v625_v33, %v624_v53  ;;  %v308_v43 = vrot.slane %v307_v62, 4  ;;  %v325_v34 = vadd.f32 %v324_v2, %v323_v0  ;;  %v333_v56 = vsel %vm232_vm1, %v223_v25, 0.0 }
 0x147   :  { %1153 = vmatprep.mubr.msk.f32.mxu0 %vm232_vm1, %v627_v49  ;;  %v317_v3 = vrot.slane %v316_v41, 4  ;;  %v334_v7 = vadd.f32 %v333_v56, %v332_v6  ;;  %v341_v8 = vsel %vm232_vm1, %v224_v32, 0.0  ;;  %v342_v9 = vsel %vm232_vm1, %v225_v44, 0.0 }
 0x148   :  { %v309_v10 = vadd.f32 %v308_v43, %v307_v62  ;;  %v326_v35 = vrot.slane %v325_v34, 4  ;;  %v343_v11 = vadd.f32 %v342_v9, %v341_v8  ;;  %v350_v24 = vsel %vm232_vm1, %v226_v50, 0.0 }
 0x149   :  { %v318_v12 = vadd.f32 %v317_v3, %v316_v41  ;;  %v335_v13 = vrot.slane %v334_v7, 4  ;;  %v351_v14 = vsel %vm232_vm1, %v227_v51, 0.0  ;;  %v359_v4 = vsel %vm232_vm1, %v228_v54, 0.0 }
 0x14a   :  { %v310_v15 = vrot.slane %v309_v10, 2  ;;  %v327_v36 = vadd.f32 %v326_v35, %v325_v34  ;;  %v344_v16 = vrot.slane %v343_v11, 4  ;;  %v352_v39 = vadd.f32 %v351_v14, %v350_v24 }
 0x14b   :  { %v319_v17 = vrot.slane %v318_v12, 2  ;;  %v336_v18 = vadd.f32 %v335_v13, %v334_v7  ;;  %v360_v20 = vsel %vm232_vm1, %v229_v55, 0.0  ;;  %v368_v21 = vsel %vm232_vm1, %v230_v57, 0.0 }
 0x14c   :  { %v311_v22 = vadd.f32 %v310_v15, %v309_v10  ;;  %v328_v5 = vrot.slane %v327_v36, 2  ;;  %v345_v40 = vadd.f32 %v344_v16, %v343_v11  ;;  %v353_v26 = vrot.slane %v352_v39, 4 }
 0x14d   :  { %v320_v27 = vadd.f32 %v319_v17, %v318_v12  ;;  %v337_v28 = vrot.slane %v336_v18, 2  ;;  %v361_v29 = vadd.f32 %v360_v20, %v359_v4  ;;  %v369_v30 = vsel %vm232_vm1, %v231_v58, 0.0 }
 0x14e   :  { %v312_v31 = vrot.slane %v311_v22, 1  ;;  %v329_v25 = vadd.f32 %v328_v5, %v327_v36  ;;  %v346_v32 = vrot.slane %v345_v40, 2  ;;  %v354_v37 = vadd.f32 %v353_v26, %v352_v39 }
 0x14f   :  { %v321_v44 = vrot.slane %v320_v27, 1  ;;  %v338_v50 = vadd.f32 %v337_v28, %v336_v18  ;;  %v362_v51 = vrot.slane %v361_v29, 4  ;;  %v370_v52 = vadd.f32 %v369_v30, %v368_v21  ;;  %v965_v28 = vld [vmem:[#allocation8 + $0x28] sm:$0xff] }
 0x150   :  { %v313_v53 = vadd.f32 %v312_v31, %v311_v22  ;;  %v330_v54 = vrot.slane %v329_v25, 1  ;;  %v347_v55 = vadd.f32 %v346_v32, %v345_v40  ;;  %v355_v57 = vrot.slane %v354_v37, 2  ;;  %v800_v40 = vld [vmem:[#allocation8 + $0x10] sm:$0xff] }
 0x151   :  { %v322_v59 = vadd.f32 %v321_v44, %v320_v27  ;;  %v339_v61 = vrot.slane %v338_v50, 1  ;;  %v363_v33 = vadd.f32 %v362_v51, %v361_v29  ;;  %v371_v62 = vrot.slane %v370_v52, 4  ;;  %v964_v27 = vld [vmem:[#allocation8 + $0x20] sm:$0xff] }
 0x152   :  { %v331_v63 = vadd.f32 %v330_v54, %v329_v25  ;;  %v348_v19 = vrot.slane %v347_v55, 1  ;;  %v356_v41 = vadd.f32 %v355_v57, %v354_v37  ;;  %v419_v58 = vadd.f32 %v1519_v23, %v313_v53 }
 0x153   :  { %v340_v0 = vadd.f32 %v339_v61, %v338_v50  ;;  %v364_v2 = vrot.slane %v363_v33, 2  ;;  %v372_v6 = vadd.f32 %v371_v62, %v370_v52  ;;  %v420_v49 = vadd.f32 %v388_v42, %v322_v59 }
 0x154   :  { %v349_v43 = vadd.f32 %v348_v19, %v347_v55  ;;  %v357_v34 = vrot.slane %v356_v41, 1  ;;  %v421_v56 = vadd.f32 %v389_v45, %v331_v63  ;;  %v1216_v3 = vpack.c.bf16 %v1575_v60, %v1579_v1 }
 0x155   :  { %v365_v7 = vadd.f32 %v364_v2, %v363_v33  ;;  %v373_v8 = vrot.slane %v372_v6, 2  ;;  %v422_v9 = vadd.f32 %v390_v46, %v340_v0  ;;  %v628_v10 = vrot.slane %v420_v49, 7 }
 0x156   :  { %v358_v35 = vadd.f32 %v357_v34, %v356_v41  ;;  %v393_v11 = vrot.slane %v1519_v23, 6  ;;  %v423_v42 = vadd.f32 %v391_v47, %v349_v43  ;;  %v630_v24 = vrot.slane %v421_v56, 6 }
 0x157   :  { %v366_v12 = vrot.slane %v365_v7, 1  ;;  %v374_v13 = vadd.f32 %v373_v8, %v372_v6  ;;  %v629_v45 = vsel %vm608_vm2, %v628_v10, %v419_v58  ;;  %v632_v14 = vrot.slane %v422_v9, 5 }
 0x158   :  { %v424_v60 = vadd.f32 %v392_v48, %v358_v35  ;;  %v631_v1 = vsel %vm611_vm3, %v630_v24, %v629_v45  ;;  %v634_v4 = vrot.slane %v423_v42, 4  ;;  %v394_v36 = vrot.slane %v1519_v23, 7  ;;  %v801_v23 = vld [vmem:[#allocation8 + $0x18] sm:$0xff] }
 0x159   :  { %v367_v46 = vadd.f32 %v366_v12, %v365_v7  ;;  %v375_v15 = vrot.slane %v374_v13, 1  ;;  %v633_v16 = vsel %vm614_vm4, %v632_v14, %v631_v1 }
 0x15a   :  { %v635_v47 = vsel %vm617_vm5, %v634_v4, %v633_v16  ;;  %v636_v39 = vrot.slane %v424_v60, 3 }
 0x15b   :  { %v376_v17 = vadd.f32 %v375_v15, %v374_v13  ;;  %v425_v18 = vadd.f32 %v393_v11, %v367_v46 }
 0x15c   :  { %v637_v20 = vsel %vm620_vm6, %v636_v39, %v635_v47 }
 0x15d   :  { %v426_v21 = vadd.f32 %v394_v36, %v376_v17  ;;  %v638_v22 = vrot.slane %v425_v18, 2 }
 0x15f   :  { %v639_v48 = vsel %vm623_vm7, %v638_v22, %v637_v20  ;;  %v640_v5 = vrot.slane %v426_v21, 1 }
 0x161   :  { %v641_v26 = vsel %vm626_vm8, %v640_v5, %v639_v48 }
 0x162   :  { %1154 = vmatmul.mubr.msk.f32.vlgmr.msra.gmra.mrb[0].mxu0 %vm232_vm1, %v641_v26 }
 0x163   :  { %1211 = vmatpush3.bf16.msra.mxu0 %v1571_v38  ;;  %1167 = vmatprep.mubr.msk.f32.mxu0 %vm86_vm0, %v800_v40 }
 0x164   :  { %1217 = vmatprep.subr.bf16.mxu0 %v1216_v3 }
 0x16a   :  { %1168 = vmatmul.mubr.msk.f32.vlgmr.msra.gmra.mrb[0].mxu0 %vm86_vm0, %v801_v23 }
 0x16b   :  { %1219 = vmatpush3.bf16.msra.mxu0 %v1216_v3  ;;  %1181 = vmatprep.mubr.msk.f32.mxu0 %vm86_vm0, %v964_v27 }
 0x172   :  { %1182 = vmatmul.mubr.msk.f32.vlgmr.msra.gmra.mrb[0].mxu0 %vm86_vm0, %v965_v28 }
 0x245   :  { %v1183_v29 = vpop.f32.mrb[0].mxu0 }
 0x246   :  { %1050 = vst.msk [vmem:[#allocation10 + $0x8] sm:$0xff] %vm86_vm0, %v1183_v29  ;;  %v1038_v38 = vpop.f32.mrb[1].mxu0 }
 0x247   :  { %1049 = vst.msk [vmem:[#allocation10] sm:$0xff] %vm86_vm0, %v1038_v38 }
 0x248   :  { %1332 = shalt.err (!%p1329_p8)
}
 0x249   :  { %s1333_s28 = scalar_lea.hbm %s1692_s7, 256 }
 0x24a   :  { %p1334_p9 = scmp.ne.s32.totalorder %s1692_s7, %s1333_s28  ;;  %p1337_p10 = scmp.lt.u32.totalorder %s1333_s28, %s1692_s7 }
 0x24c   :  { %p1339_p11 = pnand %p1337_p10, %p1334_p9 }
 0x24e   :  { %1342 = shalt.err (!%p1339_p11)
}
 0x24f   :  { %1062 = dma.vmem_to_hbm [thread:$0]  %s1057_s2, 256, %s1692_s7, [#allocation4], %s1353_s13, %s1353_s13, %s1354_s14  }
 0x250   :  { %1349 = dma.done.wait [#allocation4], 256  }
 0x251   :  { %1350 = vsyncadd [#allocation4], 4294967040 }
 0x252   :  { %1066 = vsyncpa [#allocation3], 1 }
 0x253   :  { %1067 = vsyncpa [#allocation6], 1 }
 0x254   :  { %1068 = vsyncpa [#allocation9], 1 }
 0x255   :  { %1069 = vsyncpa [#allocation4], 1 }

</bundles_post_ra>
